<compile_context>
chip_gen: v7x
topology: tpu7x:2x2x1
jax: 0.10.0
libtpu: 0.0.40
codegen_flags: <defaults>
</compile_context>

<pallas_src>
import math

import jax
import jax.numpy as jnp
from jax.experimental import pallas as pl
from jax.experimental.pallas import tpu as pltpu


def _copy_kernel(x_ref, o_ref):
    # Pure tile copy: one HBM->VMEM DMA in, one VMEM->HBM DMA out per grid step,
    # pipelined (double-buffered) by the BlockSpec machinery.
    o_ref[...] = x_ref[...]


def _resolve_shape(total: int, shape):
    """Resolve a single -1 dimension exactly like torch.Tensor.view."""
    shape = list(shape)
    if shape.count(-1) > 1:
        raise ValueError("only one dimension can be inferred")
    if -1 in shape:
        known = 1
        for s in shape:
            if s != -1:
                known *= s
        if known == 0 or total % known != 0:
            raise ValueError(f"shape {shape} is invalid for input of size {total}")
        shape[shape.index(-1)] = total // known
    if math.prod(shape) != total:
        raise ValueError(f"shape {shape} is invalid for input of size {total}")
    return tuple(shape)


# Per-tile byte budget: 4 live buffers (in/out, double-buffered) * 2 MiB = 8 MiB,
# comfortably below the smallest scoped-VMEM default (16 MiB on v5e).
_MAX_TILE_BYTES = 2 * 1024 * 1024
_MAX_LANE = 2048  # lane-dense: big multiple of 128 keeps the vst slot unmasked


def _pick_kernel_layout(total: int, dtype):
    """Choose a (rows, lane, tile_rows) slab layout for the flat copy, or None."""
    if total == 0 or total % 128 != 0:
        return None  # tiny / unaligned totals fall back to a single full block
    itemsize = jnp.dtype(dtype).itemsize
    lane = 128
    while lane * 2 <= _MAX_LANE and total % (lane * 2) == 0:
        lane *= 2
    rows = total // lane
    max_rows = max(1, _MAX_TILE_BYTES // (lane * itemsize))
    if rows <= max_rows:
        tile_rows = rows  # single block along rows; equals full dim -> always legal
    else:
        tile_rows = None
        cand = (max_rows // 8) * 8
        while cand >= 8:
            if rows % cand == 0:  # multiple of 8 that evenly divides rows
                tile_rows = cand
                break
            cand -= 8
        if tile_rows is None:
            tile_rows = rows  # no nice divisor; fall back to one big block
    return rows, lane, tile_rows


def _pallas_materialize(flat):
    """Materialize a flat 1-D array through a tiled, lane-dense Pallas copy."""
    total = flat.shape[0]
    layout = _pick_kernel_layout(total, flat.dtype)

    if layout is None:
        # Small / 128-unaligned element counts: whole array as a single block.
        return pl.pallas_call(
            _copy_kernel,
            out_shape=jax.ShapeDtypeStruct(flat.shape, flat.dtype),
            in_specs=[pl.BlockSpec(memory_space=pltpu.MemorySpace.VMEM)],
            out_specs=pl.BlockSpec(memory_space=pltpu.MemorySpace.VMEM),
        )(flat)

    rows, lane, tile_rows = layout
    y = jnp.reshape(flat, (rows, lane))
    grid = (rows // tile_rows,)

    out = pl.pallas_call(
        _copy_kernel,
        out_shape=jax.ShapeDtypeStruct((rows, lane), flat.dtype),
        grid=grid,
        in_specs=[pl.BlockSpec((tile_rows, lane), lambda i: (i, 0))],
        out_specs=pl.BlockSpec((tile_rows, lane), lambda i: (i, 0)),
        compiler_params=pltpu.CompilerParams(
            dimension_semantics=("parallel",),  # shard the copy across v7x's 2 TCs
        ),
    )(y)
    return jnp.reshape(out, (total,))


class View:
    """JAX/Pallas equivalent of the PyTorch `View` nn.Module."""

    def __init__(self, *shape):
        self.shape = shape

    def __call__(self, x):
        total = x.size
        out_shape = _resolve_shape(total, self.shape)

        if total == 0:
            # Degenerate empty tensor: pure metadata reshape, nothing to copy.
            return jnp.reshape(x, out_shape)

        # Copy in the input's native flattened (contiguous, lane-dense) layout,
        # then apply the user-requested view shape outside the kernel.
        flat = jnp.reshape(x, (total,))
        copied = _pallas_materialize(flat)
        return jnp.reshape(copied, out_shape)


if __name__ == "__main__":
    key = jax.random.PRNGKey(0)
    # Small NCHW input consistent with a typical use of View: (B, C, H, W) -> (B, -1)
    x = jax.random.normal(key, (2, 4, 16, 16), dtype=jnp.float32)

    view = View(2, -1)  # flatten everything but the batch dim
    out = view(x)
    out = jax.block_until_ready(out)

    # Correctness check against plain JAX reshape (torch .view reference semantics).
    ref = jnp.reshape(x, (2, -1))
    assert out.shape == (2, 1024), out.shape
    assert out.dtype == x.dtype
    assert bool(jnp.allclose(out, ref)), "Pallas view output mismatch"

    print("KERNEL_OK")
</pallas_src>

<mosaic_0001>
module attributes {stable_mosaic.version = 11 : i64} {
  func.func @_copy_kernel(%arg0: i32, %arg1: memref<1x2048xf32, #tpu.memory_space<vmem>>, %arg2: memref<1x2048xf32, #tpu.memory_space<vmem>>) attributes {dimension_semantics = [#tpu.dimension_semantics<parallel>], iteration_bounds = array<i64: 1>, scalar_prefetch = 0 : i64, scratch_operands = 0 : i64, tpu.core_type = #tpu.core_type<tc>, window_params = [{transform_indices = @transform_0, window_bounds = array<i64: 1, 2048>}, {transform_indices = @transform_1, window_bounds = array<i64: 1, 2048>}]} {
    %c0 = arith.constant 0 : index
    %c0_0 = arith.constant 0 : index
    %0 = vector.load %arg1[%c0, %c0_0] : memref<1x2048xf32, #tpu.memory_space<vmem>>, vector<1x2048xf32>
    %c0_1 = arith.constant 0 : index
    %c0_2 = arith.constant 0 : index
    %1 = vector.load %arg2[%c0_1, %c0_2] : memref<1x2048xf32, #tpu.memory_space<vmem>>, vector<1x2048xf32>
    tpu.vector_store %arg2[%c0_1, %c0_2], %0 {strides = array<i32>} : memref<1x2048xf32, #tpu.memory_space<vmem>>, vector<1x2048xf32>,
    return
  }
  func.func @transform_0(%arg0: i32) -> (i32, i32) {
    %c0_i32 = arith.constant 0 : i32
    %c0_i32_0 = arith.constant 0 : i32
    return %arg0, %c0_i32 : i32, i32
  }
  func.func @transform_1(%arg0: i32) -> (i32, i32) {
    %c0_i32 = arith.constant 0 : i32
    %c0_i32_0 = arith.constant 0 : i32
    return %arg0, %c0_i32 : i32, i32
  }
}

</mosaic_0001>

<bundles_post_ra>
// kernel: tpu_custom_call.1
= control target key start
LH: loop header
LB: loop body
LE: loop exit
PB: predicated region body
PF: predicated region fallthrough
CT: control target
= control target key end

     0   :  { %6 = vsyncpa [#allocation3], 0  ;;  %s126_s0 = inlined_call_operand.hbm [shape: f32[1,2048], index: 0, kind: input, shape index: {}]   ;;  %s127_s1 = inlined_call_operand.hbm [shape: f32[1,2048], index: 1, kind: output, shape index: {}]  }
   0x1   :  { %7 = vsyncpa [#allocation4], 0  ;;  %s90_s6 = smov [#allocation2]   ;;  %s42_s10 = scalar_lea.hbm %s126_s0, 256 }
   0x2   :  { %s14_s7 = sshll.u32 %s90_s6, 4  ;;  %p43_p0 = scmp.ne.s32.totalorder %s126_s0, %s42_s10  ;;  %s15_s7 = int_to_ptr.vmem [resolvable:$true] %s14_s7 }
   0x3   :  { %p46_p1 = scmp.lt.u32.totalorder %s42_s10, %s126_s0 }
   0x5   :  { %p48_p2 = pnand %p46_p1, %p43_p0 }
   0x7   :  { %51 = shalt.err (!%p48_p2)
}
   0x8   :  { %s52_s15 = scalar_lea.vmem %s15_s7, 256  ;;  %p57_p4 = scmp.lt.s32.totalorder %s15_s7, %s15_s7 }
   0x9   :  { %p53_p3 = scmp.ne.s32.totalorder %s15_s7, %s52_s15  ;;  %p58_p5 = scmp.lt.s32.totalorder %s52_s15, %s52_s15 }
   0xb   :  { %p59_p6 = por %p58_p5, %p57_p4 }
   0xd   :  { %p60_p7 = pnand %p59_p6, %p53_p3 }
   0xf   :  { %63 = shalt.err (!%p60_p7)
}
  0x10   :  { %17 = dma.hbm_to_vmem [thread:$0]  %s126_s0, 256, %s15_s7, [#allocation3]  }
  0x11   :  { %86 = dma.done.wait [#allocation3], 256  }
  0x12   :  { %87 = vsyncadd [#allocation3], 4294967040  ;;  %s91_s18 = smov [#allocation5]   ;;  %v21_v0 = vld [vmem:[#allocation2] sm:$0xff]  ;;  %v22_v1 = vld [vmem:[#allocation2 + $0x8] sm:$0xff] }
  0x13   :  { %s31_s19 = sshll.u32 %s91_s18, 4  ;;  %23 = vst [vmem:[#allocation5] sm:$0xff] %v21_v0  ;;  %24 = vst [vmem:[#allocation5 + $0x8] sm:$0xff] %v22_v1  ;;  %s32_s19 = int_to_ptr.vmem [resolvable:$true] %s31_s19 }
  0x14   :  { %s64_s20 = scalar_lea.vmem %s32_s19, 256  ;;  %p69_p9 = scmp.lt.s32.totalorder %s32_s19, %s32_s19 }
  0x15   :  { %p65_p8 = scmp.ne.s32.totalorder %s32_s19, %s64_s20  ;;  %p70_p10 = scmp.lt.s32.totalorder %s64_s20, %s64_s20 }
  0x17   :  { %p71_p11 = por %p70_p10, %p69_p9 }
  0x19   :  { %p72_p12 = pnand %p71_p11, %p65_p8 }
  0x1b   :  { %75 = shalt.err (!%p72_p12)
}
  0x1c   :  { %s76_s0 = scalar_lea.hbm %s127_s1, 256 }
  0x1d   :  { %p77_p13 = scmp.ne.s32.totalorder %s127_s1, %s76_s0  ;;  %p80_p0 = scmp.lt.u32.totalorder %s76_s0, %s127_s1 }
  0x1f   :  { %p82_p1 = pnand %p80_p0, %p77_p13 }
  0x21   :  { %85 = shalt.err (!%p82_p1)
}
  0x22   :  { %34 = dma.vmem_to_hbm [thread:$0]  %s32_s19, 256, %s127_s1, [#allocation4]  }
  0x23   :  { %88 = dma.done.wait [#allocation4], 256  }
  0x24   :  { %89 = vsyncadd [#allocation4], 4294967040 }
  0x25   :  { %38 = vsyncpa [#allocation3], 1 }
  0x26   :  { %39 = vsyncpa [#allocation4], 1 }

</bundles_post_ra>
